<compile_context>
chip_gen: v7x
topology: tpu7x:2x2x1
jax: 0.10.0
libtpu: 0.0.40
codegen_flags: <defaults>
</compile_context>

<pallas_src>
import functools

import jax
import jax.numpy as jnp
from jax.experimental import pallas as pl
from jax.experimental.pallas import tpu as pltpu


def _round_up(x, m):
    return ((x + m - 1) // m) * m


def actor_kernel(x_ref, w1_ref, w2_ref, w3_ref, b_ref, o_ref):
    # packed biases: [0:128) = b1, [128:384) = b2, [384:) = b3 with the
    # softmax padding mask (-1e30) already baked into b3's padded lanes.
    b1 = b_ref[:, 0:128]
    b2 = b_ref[:, 128:384]
    b3 = b_ref[:, 384:]

    # layer 1: (TB, S) @ (S, 128) + b1, ReLU   (f32; tiny K, keeps raw state
    # exact -- casting x/w1 to bf16 is an optional, nearly-free consistency
    # change, see perf notes)
    h1 = jnp.dot(x_ref[...], w1_ref[...], preferred_element_type=jnp.float32)
    h1 = jnp.maximum(h1 + b1, 0.0)

    # layer 2: (TB, 128) @ (128, 256) + b2, ReLU   (bf16 inputs, f32 accum)
    h2 = jnp.dot(h1.astype(jnp.bfloat16), w2_ref[...],
                 preferred_element_type=jnp.float32)
    h2 = jnp.maximum(h2 + b2, 0.0)

    # layer 3: (TB, 256) @ (256, A_pad) + b3   (bf16 inputs, f32 accum)
    logits = jnp.dot(h2.astype(jnp.bfloat16), w3_ref[...],
                     preferred_element_type=jnp.float32) + b3

    # softmax; padded lanes carry -1e30 from b3, so exp(-1e30 - m) == 0 and
    # they contribute nothing.  Exact divide (NOT pl.reciprocal(approx=True))
    # so each row sums to 1 within f32 rounding.
    m = jnp.max(logits, axis=-1, keepdims=True)
    e = jnp.exp(logits - m)
    s = jnp.sum(e, axis=-1, keepdims=True)
    o_ref[...] = (e / s).astype(o_ref.dtype)


def prepare_params(params, *, state_size, action_size):
    """One-time packing / padding / casting of the raw params (hoisted out of
    the per-call path)."""
    del state_size  # implicit in w1's shape
    w1, b1, w2, b2, w3, b3 = params
    n_out = action_size - 1
    A_pad = _round_up(max(n_out, 1), 128)

    w1_p = w1.astype(jnp.float32)                        # (state_size, 128)
    w2_p = w2.astype(jnp.bfloat16)                       # (128, 256)
    w3_p = (jnp.zeros((256, A_pad), jnp.float32)
            .at[:, :n_out].set(w3.astype(jnp.float32))
            .astype(jnp.bfloat16))                       # (256, A_pad)

    # packed biases; padded b3 lanes hold the softmax mask.  A large finite
    # negative (-1e30) is used instead of -inf so max-subtraction never sees
    # an inf - inf edge case.
    b_p = jnp.zeros((1, 384 + A_pad), jnp.float32)
    b_p = (b_p.at[0, 0:128].set(b1.astype(jnp.float32))
              .at[0, 128:384].set(b2.astype(jnp.float32))
              .at[0, 384:384 + n_out].set(b3.astype(jnp.float32))
              .at[0, 384 + n_out:].set(-1e30))
    return (w1_p, w2_p, w3_p, b_p)


def actor_forward(state, prepared, *, action_size, batch_tile=512,
                  small_batch_max=64, unpad=True, out_dtype=jnp.float32):
    """Softmax action probabilities for a batch of states.

    unpad=True  -> (B, action_size - 1) float array.
    unpad=False -> raw padded (B_pad, A_pad) kernel output.  Padded LANES
      (columns >= action_size - 1) are exactly 0; padded ROWS (>= B) are NOT
      zero -- they hold the softmax of the bias-only forward (finite, valid
      numbers) and must be sliced off by the consumer.  Hot throughput callers
      should use unpad=False (skips one full HBM re-read of the output) and
      out_dtype=jnp.bfloat16 (halves the dominant output write stream).
    """
    w1_p, w2_p, w3_p, b_p = prepared
    B, S = state.shape
    n_out = action_size - 1
    A_pad = w3_p.shape[1]
    B_TOT = b_p.shape[1]
    assert batch_tile % 8 == 0 and batch_tile >= 8

    x = state.astype(jnp.float32)
    if B <= small_batch_max:
        # Latency path: whole batch as one block, no padding at all (block
        # dims equal to the full array dims are legal even off (8, 128)).
        TB = B
        B_pad = B
    else:
        # Throughput path: tiles of up to batch_tile rows, but always >= 2
        # grid steps so ("parallel",) batch sharding keeps both v7x
        # TensorCores busy.
        TB = min(batch_tile, _round_up(-(-B // 2), 8))
        B_pad = _round_up(B, TB)
        if B_pad != B:
            x = jnp.pad(x, ((0, B_pad - B), (0, 0)))

    probs = pl.pallas_call(
        actor_kernel,
        out_shape=jax.ShapeDtypeStruct((B_pad, A_pad), out_dtype),
        grid=(B_pad // TB,),
        in_specs=[
            pl.BlockSpec((TB, S), lambda i: (i, 0)),
            # weights/biases: constant index_map -> VMEM-resident across tiles
            pl.BlockSpec((S, 128), lambda i: (0, 0)),
            pl.BlockSpec((128, 256), lambda i: (0, 0)),
            pl.BlockSpec((256, A_pad), lambda i: (0, 0)),
            pl.BlockSpec((1, B_TOT), lambda i: (0, 0)),
        ],
        out_specs=pl.BlockSpec((TB, A_pad), lambda i: (i, 0)),
        compiler_params=pltpu.CompilerParams(
            dimension_semantics=("parallel",)),
    )(x, w1_p, w2_p, w3_p, b_p)

    # TODO(synk): per-env-step inference re-DMAs the ~132 KB of weights on
    # every pallas_call; a cross-call weight-prefetch (semaphore + VMEM
    # outputs) or batching several env states per call would hide that.
    # TODO(synk): for very large rollout batches, packing 32 rows x 4 probs
    # into one 128-lane output row would cut output HBM writes another ~32x.

    if unpad:
        return probs[:B, :n_out]
    return probs


def init_params(key, state_size, action_size):
    """Deterministic PyTorch-style Linear init: U(-1/sqrt(fan_in), +1/sqrt(fan_in))."""
    n_out = action_size - 1
    ks = jax.random.split(key, 6)

    def linear(kw, kb, fan_in, fan_out):
        bound = 1.0 / jnp.sqrt(float(fan_in))
        w = jax.random.uniform(kw, (fan_in, fan_out), jnp.float32, -bound, bound)
        b = jax.random.uniform(kb, (fan_out,), jnp.float32, -bound, bound)
        return w, b

    w1, b1 = linear(ks[0], ks[1], state_size, 128)
    w2, b2 = linear(ks[2], ks[3], 128, 256)
    w3, b3 = linear(ks[4], ks[5], 256, n_out)
    return (w1, b1, w2, b2, w3, b3)


if __name__ == "__main__":
    state_size = 3     # len(env.observation_space.spaces) for PaperTennisEnv
    action_size = 5    # env.action_space.n -> softmax over action_size - 1 = 4
    batch = 2

    key = jax.random.PRNGKey(0)
    k_x, k_p = jax.random.split(key)
    state = jax.random.normal(k_x, (batch, state_size), jnp.float32)
    params = init_params(k_p, state_size, action_size)

    # one-time parameter packing (hoisted out of the per-call path)
    prepared = prepare_params(params, state_size=state_size,
                              action_size=action_size)

    fwd = jax.jit(functools.partial(actor_forward, action_size=action_size))
    probs = jax.block_until_ready(fwd(state, prepared))

    # pure-JAX f32 reference (same semantics as the PyTorch forward); layers
    # 2/3 use bf16 weights with f32 accumulation in the kernel, hence the
    # loose elementwise tolerance.  Rows are exact-divide normalized, so the
    # sum-to-1 check is tight.
    w1, b1, w2, b2, w3, b3 = params
    h = jax.nn.relu(state @ w1 + b1)
    h = jax.nn.relu(h @ w2 + b2)
    ref = jax.nn.softmax(h @ w3 + b3, axis=-1)

    assert probs.shape == (batch, action_size - 1)
    assert jnp.allclose(probs, ref, atol=1e-2), "mismatch vs f32 reference"
    assert jnp.allclose(jnp.sum(probs, axis=-1), 1.0, atol=1e-3)

    # TODO(synk): torch.distributions.Categorical (sampling / log_prob) has no
    # Pallas equivalent; the kernel returns its defining probabilities.
    print("KERNEL_OK")
</pallas_src>

<mosaic_0001>
module attributes {stable_mosaic.version = 11 : i64} {
  func.func @actor_kernel(%arg0: i32, %arg1: memref<2x3xf32, #tpu.memory_space<vmem>>, %arg2: memref<3x128xf32, #tpu.memory_space<vmem>>, %arg3: memref<128x256xbf16, #tpu.memory_space<vmem>>, %arg4: memref<256x128xbf16, #tpu.memory_space<vmem>>, %arg5: memref<1x512xf32, #tpu.memory_space<vmem>>, %arg6: memref<2x128xf32, #tpu.memory_space<vmem>>) attributes {dimension_semantics = [#tpu.dimension_semantics<parallel>], iteration_bounds = array<i64: 1>, scalar_prefetch = 0 : i64, scratch_operands = 0 : i64, tpu.core_type = #tpu.core_type<tc>, window_params = [{transform_indices = @transform_0, window_bounds = array<i64: 2, 3>}, {pipeline_mode = #tpu.pipeline_mode<synchronous>, transform_indices = @transform_1, window_bounds = array<i64: 3, 128>}, {pipeline_mode = #tpu.pipeline_mode<synchronous>, transform_indices = @transform_2, window_bounds = array<i64: 128, 256>}, {pipeline_mode = #tpu.pipeline_mode<synchronous>, transform_indices = @transform_3, window_bounds = array<i64: 256, 128>}, {pipeline_mode = #tpu.pipeline_mode<synchronous>, transform_indices = @transform_4, window_bounds = array<i64: 1, 512>}, {transform_indices = @transform_5, window_bounds = array<i64: 2, 128>}]} {
    %c0 = arith.constant 0 : index
    %c0_0 = arith.constant 0 : index
    %0 = vector.load %arg5[%c0, %c0_0] : memref<1x512xf32, #tpu.memory_space<vmem>>, vector<1x128xf32>
    %c0_1 = arith.constant 0 : index
    %c128 = arith.constant 128 : index
    %1 = vector.load %arg5[%c0_1, %c128] : memref<1x512xf32, #tpu.memory_space<vmem>>, vector<1x256xf32>
    %c0_2 = arith.constant 0 : index
    %c384 = arith.constant 384 : index
    %2 = vector.load %arg5[%c0_2, %c384] : memref<1x512xf32, #tpu.memory_space<vmem>>, vector<1x128xf32>
    %c0_3 = arith.constant 0 : index
    %c0_4 = arith.constant 0 : index
    %3 = vector.load %arg1[%c0_3, %c0_4] : memref<2x3xf32, #tpu.memory_space<vmem>>, vector<2x3xf32>
    %c0_5 = arith.constant 0 : index
    %c0_6 = arith.constant 0 : index
    %4 = vector.load %arg2[%c0_5, %c0_6] : memref<3x128xf32, #tpu.memory_space<vmem>>, vector<3x128xf32>
    %cst = arith.constant dense<0.000000e+00> : vector<2x128xf32>
    %5 = tpu.matmul %3, %4, %cst {dimension_numbers = #tpu.dot_dimension_numbers<[1], [0], [0], [1], [0, 0, 1, 1], [], []>} : vector<2x3xf32>, vector<3x128xf32>, vector<2x128xf32> -> vector<2x128xf32>
    %6 = vector.broadcast %0 : vector<1x128xf32> to vector<2x128xf32>
    %7 = arith.addf %5, %6 : vector<2x128xf32>
    %cst_7 = arith.constant 0.000000e+00 : f32
    %8 = vector.broadcast %cst_7 : f32 to vector<2x128xf32>
    %9 = arith.maximumf %7, %8 : vector<2x128xf32>
    %10 = arith.truncf %9 : vector<2x128xf32> to vector<2x128xbf16>
    %c0_8 = arith.constant 0 : index
    %c0_9 = arith.constant 0 : index
    %11 = vector.load %arg3[%c0_8, %c0_9] : memref<128x256xbf16, #tpu.memory_space<vmem>>, vector<128x256xbf16>
    %cst_10 = arith.constant dense<0.000000e+00> : vector<2x256xf32>
    %12 = tpu.matmul %10, %11, %cst_10 {dimension_numbers = #tpu.dot_dimension_numbers<[1], [0], [0], [1], [0, 0, 1, 1], [], []>} : vector<2x128xbf16>, vector<128x256xbf16>, vector<2x256xf32> -> vector<2x256xf32>
    %13 = vector.broadcast %1 : vector<1x256xf32> to vector<2x256xf32>
    %14 = arith.addf %12, %13 : vector<2x256xf32>
    %cst_11 = arith.constant 0.000000e+00 : f32
    %15 = vector.broadcast %cst_11 : f32 to vector<2x256xf32>
    %16 = arith.maximumf %14, %15 : vector<2x256xf32>
    %17 = arith.truncf %16 : vector<2x256xf32> to vector<2x256xbf16>
    %c0_12 = arith.constant 0 : index
    %c0_13 = arith.constant 0 : index
    %18 = vector.load %arg4[%c0_12, %c0_13] : memref<256x128xbf16, #tpu.memory_space<vmem>>, vector<256x128xbf16>
    %cst_14 = arith.constant dense<0.000000e+00> : vector<2x128xf32>
    %19 = tpu.matmul %17, %18, %cst_14 {dimension_numbers = #tpu.dot_dimension_numbers<[1], [0], [0], [1], [0, 0, 1, 1], [], []>} : vector<2x256xbf16>, vector<256x128xbf16>, vector<2x128xf32> -> vector<2x128xf32>
    %20 = vector.broadcast %2 : vector<1x128xf32> to vector<2x128xf32>
    %21 = arith.addf %19, %20 : vector<2x128xf32>
    %cst_15 = arith.constant dense<0xFF800000> : vector<2xf32>
    %22 = vector.multi_reduction <maximumf>, %21, %cst_15 [1] : vector<2x128xf32> to vector<2xf32>
    %23 = vector.shape_cast %22 : vector<2xf32> to vector<2x1xf32>
    %24 = vector.broadcast %23 : vector<2x1xf32> to vector<2x128xf32>
    %25 = arith.subf %21, %24 : vector<2x128xf32>
    %26 = math.exp %25 : vector<2x128xf32>
    %cst_16 = arith.constant dense<0.000000e+00> : vector<2xf32>
    %27 = vector.multi_reduction <add>, %26, %cst_16 [1] : vector<2x128xf32> to vector<2xf32>
    %28 = vector.shape_cast %27 : vector<2xf32> to vector<2x1xf32>
    %29 = vector.broadcast %28 : vector<2x1xf32> to vector<2x128xf32>
    %30 = arith.divf %26, %29 : vector<2x128xf32>
    %c0_17 = arith.constant 0 : index
    %c0_18 = arith.constant 0 : index
    %31 = vector.load %arg6[%c0_17, %c0_18] : memref<2x128xf32, #tpu.memory_space<vmem>>, vector<2x128xf32>
    tpu.vector_store %arg6[%c0_17, %c0_18], %30 {strides = array<i32>} : memref<2x128xf32, #tpu.memory_space<vmem>>, vector<2x128xf32>,
    return
  }
  func.func @transform_0(%arg0: i32) -> (i32, i32) {
    %c0_i32 = arith.constant 0 : i32
    %c0_i32_0 = arith.constant 0 : i32
    return %arg0, %c0_i32 : i32, i32
  }
  func.func @transform_1(%arg0: i32) -> (i32, i32) {
    %c0_i32 = arith.constant 0 : i32
    %c0_i32_0 = arith.constant 0 : i32
    %c0_i32_1 = arith.constant 0 : i32
    return %c0_i32, %c0_i32_0 : i32, i32
  }
  func.func @transform_2(%arg0: i32) -> (i32, i32) {
    %c0_i32 = arith.constant 0 : i32
    %c0_i32_0 = arith.constant 0 : i32
    %c0_i32_1 = arith.constant 0 : i32
    return %c0_i32, %c0_i32_0 : i32, i32
  }
  func.func @transform_3(%arg0: i32) -> (i32, i32) {
    %c0_i32 = arith.constant 0 : i32
    %c0_i32_0 = arith.constant 0 : i32
    %c0_i32_1 = arith.constant 0 : i32
    return %c0_i32, %c0_i32_0 : i32, i32
  }
  func.func @transform_4(%arg0: i32) -> (i32, i32) {
    %c0_i32 = arith.constant 0 : i32
    %c0_i32_0 = arith.constant 0 : i32
    %c0_i32_1 = arith.constant 0 : i32
    return %c0_i32, %c0_i32_0 : i32, i32
  }
  func.func @transform_5(%arg0: i32) -> (i32, i32) {
    %c0_i32 = arith.constant 0 : i32
    %c0_i32_0 = arith.constant 0 : i32
    return %arg0, %c0_i32 : i32, i32
  }
}

</mosaic_0001>

<bundles_post_ra>
// kernel: actor_forward.1
= control target key start
LH: loop header
LB: loop body
LE: loop exit
PB: predicated region body
PF: predicated region fallthrough
CT: control target
= control target key end

     0   :  { %10 = vsyncpa [#allocation3], 0  ;;  %s870_s0 = inlined_call_operand.hbm [shape: f32[2,3], index: 0, kind: input, shape index: {}]   ;;  %s871_s1 = inlined_call_operand.hbm [shape: f32[3,128], index: 1, kind: input, shape index: {}]   ;;  %s872_s2 = inlined_call_operand.hbm [shape: bf16[128,256], index: 2, kind: input, shape index: {}]   ;;  %s873_s3 = inlined_call_operand.hbm [shape: bf16[256,128], index: 3, kind: input, shape index: {}]   ;;  %s874_s4 = inlined_call_operand.vmem [shape: f32[1,512], index: 4, kind: input, shape index: {}]   ;;  %s875_s5 = inlined_call_operand.hbm [shape: f32[2,128], index: 5, kind: output, shape index: {}]  }
   0x1   :  { %11 = vsyncpa [#allocation6], 0 }
   0x2   :  { %12 = vsyncpa [#allocation9], 0 }
   0x3   :  { %13 = vsyncpa [#allocation4], 0  ;;  %s759_s18 = smov [#allocation5]   ;;  %s760_s20 = smov [#allocation2]  }
   0x4   :  { %s30_s19 = sshll.u32 %s759_s18, 4  ;;  %s20_s21 = sshll.u32 %s760_s20, 4  ;;  %s31_s19 = int_to_ptr.vmem [resolvable:$true] %s30_s19  ;;  %s21_s21 = int_to_ptr.vmem [resolvable:$true] %s20_s21 }
   0x5   :  { %s641_s24 = scalar_lea.hbm %s871_s1, 64 }
   0x6   :  { %p642_p0 = scmp.ne.s32.totalorder %s871_s1, %s641_s24  ;;  %p645_p1 = scmp.lt.u32.totalorder %s641_s24, %s871_s1 }
   0x8   :  { %p647_p2 = pnand %p645_p1, %p642_p0 }
   0xa   :  { %650 = shalt.err (!%p647_p2)
}
   0xb   :  { %s651_s29 = scalar_lea.vmem %s31_s19, 64  ;;  %p656_p4 = scmp.lt.s32.totalorder %s31_s19, %s31_s19 }
   0xc   :  { %p652_p3 = scmp.ne.s32.totalorder %s31_s19, %s651_s29  ;;  %p657_p5 = scmp.lt.s32.totalorder %s651_s29, %s651_s29 }
   0xe   :  { %p658_p6 = por %p657_p5, %p656_p4 }
  0x10   :  { %p659_p7 = pnand %p658_p6, %p652_p3 }
  0x12   :  { %662 = shalt.err (!%p659_p7)
}
  0x13   :  { %33 = dma.hbm_to_vmem [thread:$0]  %s871_s1, 64, %s31_s19, [#allocation6]  }
  0x14   :  { %s663_s9 = scalar_lea.hbm %s870_s0, 32 }
  0x15   :  { %p664_p8 = scmp.ne.s32.totalorder %s870_s0, %s663_s9  ;;  %p667_p9 = scmp.lt.u32.totalorder %s663_s9, %s870_s0 }
  0x17   :  { %p669_p10 = pnand %p667_p9, %p664_p8 }
  0x19   :  { %672 = shalt.err (!%p669_p10)
}
  0x1a   :  { %s673_s14 = scalar_lea.vmem %s21_s21, 32  ;;  %p678_p12 = scmp.lt.s32.totalorder %s21_s21, %s21_s21 }
  0x1b   :  { %p674_p11 = scmp.ne.s32.totalorder %s21_s21, %s673_s14  ;;  %p679_p13 = scmp.lt.s32.totalorder %s673_s14, %s673_s14 }
  0x1d   :  { %p680_p0 = por %p679_p13, %p678_p12 }
  0x1f   :  { %p681_p1 = pnand %p680_p0, %p674_p11 }
  0x21   :  { %684 = shalt.err (!%p681_p1)
}
  0x22   :  { %23 = dma.hbm_to_vmem [thread:$0]  %s870_s0, 32, %s21_s21, [#allocation3]  }
  0x23   :  { %s761_s16 = smov [#allocation7]   ;;  %s685_s20 = scalar_lea.hbm %s872_s2, 2048 }
  0x24   :  { %s39_s17 = sshll.u32 %s761_s16, 4  ;;  %p686_p2 = scmp.ne.s32.totalorder %s872_s2, %s685_s20  ;;  %s40_s17 = int_to_ptr.vmem [resolvable:$true] %s39_s17 }
  0x25   :  { %p689_p3 = scmp.lt.u32.totalorder %s685_s20, %s872_s2 }
  0x27   :  { %p691_p4 = pnand %p689_p3, %p686_p2 }
  0x29   :  { %694 = shalt.err (!%p691_p4)
}
  0x2a   :  { %s695_s26 = scalar_lea.vmem %s40_s17, 2048  ;;  %p700_p6 = scmp.lt.s32.totalorder %s40_s17, %s40_s17 }
  0x2b   :  { %p696_p5 = scmp.ne.s32.totalorder %s40_s17, %s695_s26  ;;  %p701_p7 = scmp.lt.s32.totalorder %s695_s26, %s695_s26 }
  0x2d   :  { %p702_p8 = por %p701_p7, %p700_p6 }
  0x2f   :  { %p703_p9 = pnand %p702_p8, %p696_p5 }
  0x31   :  { %706 = shalt.err (!%p703_p9)
}
  0x32   :  { %s762_s0 = smov 128   ;;  %s763_s21 = smov 8  }
  0x33   :  { %45 = dma.hbm_to_vmem [thread:$0]  %s872_s2, 2048, %s40_s17, [#allocation6], %s762_s0, %s762_s0, %s763_s21  }
  0x34   :  { %s764_s29 = smov [#allocation8]   ;;  %s707_s8 = scalar_lea.hbm %s873_s3, 2048 }
  0x35   :  { %s51_s30 = sshll.u32 %s764_s29, 4  ;;  %p708_p10 = scmp.ne.s32.totalorder %s873_s3, %s707_s8  ;;  %s52_s30 = int_to_ptr.vmem [resolvable:$true] %s51_s30 }
  0x36   :  { %p711_p11 = scmp.lt.u32.totalorder %s707_s8, %s873_s3 }
  0x38   :  { %p713_p12 = pnand %p711_p11, %p708_p10 }
  0x3a   :  { %716 = shalt.err (!%p713_p12)
}
  0x3b   :  { %s717_s13 = scalar_lea.vmem %s52_s30, 2048  ;;  %p722_p0 = scmp.lt.s32.totalorder %s52_s30, %s52_s30 }
  0x3c   :  { %p718_p13 = scmp.ne.s32.totalorder %s52_s30, %s717_s13  ;;  %p723_p1 = scmp.lt.s32.totalorder %s717_s13, %s717_s13 }
  0x3e   :  { %p724_p2 = por %p723_p1, %p722_p0 }
  0x40   :  { %p725_p3 = pnand %p724_p2, %p718_p13 }
  0x42   :  { %728 = shalt.err (!%p725_p3)
}
  0x43   :  { %s765_s2 = smov 64   ;;  %s766_s14 = smov 4  }
  0x44   :  { %57 = dma.hbm_to_vmem [thread:$0]  %s873_s3, 2048, %s52_s30, [#allocation9], %s765_s2, %s765_s2, %s766_s14  }
  0x45   :  { %751 = dma.done.wait [#allocation3], 32  }
  0x46   :  { %752 = vsyncadd [#allocation3], 4294967264 }
  0x47   :  { %753 = dma.done.wait [#allocation6], 2112  }
  0x48   :  { %754 = vsyncadd [#allocation6], 4294965184 }
  0x49   :  { %755 = dma.done.wait [#allocation9], 2048  }
  0x4a   :  { %756 = vsyncadd [#allocation9], 4294965248  ;;  %v767_v0 = vmov 0.0   ;;  %vm768_vm0 = vmmov 0   ;;  %vm88_vm1 = vcmask 1042432   ;;  %vm84_vm2 = vcmask 23552  }
  0x4b   :  { %580 = vmatprep.subr.mxu0 %v767_v0  ;;  %582 = vmatprep.mubr.msk.f32.mxu0 %vm768_vm0, %v767_v0  ;;  %v77_v1 = vld [vmem:[#allocation5] sm:$0x7]  ;;  %v76_v2 = vld [vmem:[#allocation2] sm:$0x3]  ;;  %v597_v3 = vld [vmem:[#allocation7 + $0x4] ss:$8 sps:$4 sm:$0xff]   ;;  %v181_v42 = vlaneseq }
  0x4c   :  { %581 = vmatpush3.msk.msra.mxu0 %vm88_vm1, %v77_v1  ;;  %v599_v4 = vld [vmem:[#allocation7] ss:$8 sps:$4 sm:$0xff]   ;;  %v600_v5 = vld [vmem:[#allocation7 + $0x14] ss:$8 sps:$4 sm:$0xff]   ;;  %271 = vmatprep.subr.bf16.mxu1 %v597_v3  ;;  %v602_v6 = vld [vmem:[#allocation7 + $0x10] ss:$8 sps:$4 sm:$0xff]  }
  0x4d   :  { %583 = vmatmul.mubr.msk.f32.vlgmr.msra.gmra.mrb[0].mxu0 %vm84_vm2, %v76_v2  ;;  %272 = vmatpush1.bf16.msra.mxu1 %v599_v4  ;;  %v603_v7 = vld [vmem:[#allocation7 + $0x24] ss:$8 sps:$4 sm:$0xff]   ;;  %v605_v8 = vld [vmem:[#allocation7 + $0x20] ss:$8 sps:$4 sm:$0xff]   ;;  %v606_v9 = vld [vmem:[#allocation7 + $0x34] ss:$8 sps:$4 sm:$0xff]  }
  0x4e   :  { %273 = vmatprep.subr.bf16.mxu1 %v600_v5  ;;  %v608_v10 = vld [vmem:[#allocation7 + $0x30] ss:$8 sps:$4 sm:$0xff]   ;;  %v609_v11 = vld [vmem:[#allocation7 + $0x44] ss:$8 sps:$4 sm:$0xff]   ;;  %v611_v12 = vld [vmem:[#allocation7 + $0x40] ss:$8 sps:$4 sm:$0xff]  }
  0x4f   :  { %v612_v13 = vld [vmem:[#allocation7 + $0x54] ss:$8 sps:$4 sm:$0xff]   ;;  %v614_v14 = vld [vmem:[#allocation7 + $0x50] ss:$8 sps:$4 sm:$0xff]   ;;  %v615_v15 = vld [vmem:[#allocation7 + $0x64] ss:$8 sps:$4 sm:$0xff]  }
  0x50   :  { %v617_v16 = vld [vmem:[#allocation7 + $0x60] ss:$8 sps:$4 sm:$0xff]   ;;  %v618_v17 = vld [vmem:[#allocation7 + $0x74] ss:$8 sps:$4 sm:$0xff]   ;;  %v620_v18 = vld [vmem:[#allocation7 + $0x70] ss:$8 sps:$4 sm:$0xff]  }
  0x51   :  { %274 = vmatpush1.bf16.msra.mxu1 %v602_v6  ;;  %v769_v19 = vmov 0   ;;  %v621_v20 = vld [vmem:[#allocation8 + $0x40] sm:$0xff]   ;;  %v623_v22 = vld [vmem:[#allocation8 + $0x48] sm:$0xff]   ;;  %v625_v24 = vld [vmem:[#allocation8 + $0x50] sm:$0xff]   ;;  %v182_v43 = vshrl.u32 %v181_v42, 7  ;;  %vm490_vm3 = vcmask 1041408  }
  0x52   :  { %275 = vmatprep.subr.bf16.mxu1 %v603_v7  ;;  %303 = vmatprep.mubr.bf16.mxu1 %v769_v19  ;;  %v622_v21 = vld [vmem:[#allocation8] sm:$0xff]   ;;  %v624_v23 = vld [vmem:[#allocation8 + $0x8] sm:$0xff]   ;;  %v626_v25 = vld [vmem:[#allocation8 + $0x10] sm:$0xff]   ;;  %s770_s22 = smov [#allocation10]  }
  0x53   :  { %558 = vmatprep.subr.bf16.mxu0 %v621_v20  ;;  %v627_v26 = vld [vmem:[#allocation8 + $0x58] sm:$0xff]   ;;  %v629_v28 = vld [vmem:[#allocation8 + $0x60] sm:$0xff]   ;;  %v631_v30 = vld [vmem:[#allocation8 + $0x68] sm:$0xff]   ;;  %v183_v44 = vsub.s32 0, %v182_v43  ;;  %v187_v46 = vsub.s32 1, %v182_v43  ;;  %s509_s23 = sshll.u32 %s770_s22, 4  ;;  %s510_s23 = int_to_ptr.vmem [resolvable:$true] %s509_s23 }
  0x54   :  { %559 = vmatpush3.bf16.msra.mxu0 %v622_v21  ;;  %v628_v27 = vld [vmem:[#allocation8 + $0x18] sm:$0xff]   ;;  %v630_v29 = vld [vmem:[#allocation8 + $0x20] sm:$0xff]   ;;  %v632_v31 = vld [vmem:[#allocation8 + $0x28] sm:$0xff]   ;;  %p734_p5 = scmp.lt.s32.totalorder %s510_s23, %s510_s23 }
  0x55   :  { %276 = vmatpush1.bf16.msra.mxu1 %v605_v8  ;;  %560 = vmatprep.subr.bf16.mxu0 %v623_v22  ;;  %v520_v32 = vld [vmem:[%s874_s4] ss:$0 sm:$0xff]  ;;  %v635_v40 = vld [vmem:[#allocation8 + $0x78] sm:$0xff]   ;;  %v74_v45 = vld [vmem:[%s874_s4 + $0x1] sm:$0x3] }
  0x56   :  { %277 = vmatprep.subr.bf16.mxu1 %v606_v9  ;;  %v633_v38 = vld [vmem:[#allocation8 + $0x70] sm:$0xff]   ;;  %v636_v41 = vld [vmem:[#allocation8 + $0x38] sm:$0xff]   ;;  %v184_v47 = vrot.slane %v74_v45, %v183_v44  ;;  %v188_v48 = vrot.slane %v74_v45, %v187_v46 }
  0x57   :  { %v634_v39 = vld [vmem:[#allocation8 + $0x30] sm:$0xff]  }
  0x58   :  { %561 = vmatpush3.bf16.msra.mxu0 %v624_v23  ;;  %v539_v61 = vld [vmem:[%s874_s4 + $0x3] ss:$0 sm:$0xff]  ;;  %s729_s4 = scalar_lea.vmem %s510_s23, 32 }
  0x59   :  { %278 = vmatpush1.bf16.msra.mxu1 %v608_v10  ;;  %562 = vmatprep.subr.bf16.mxu0 %v625_v24  ;;  %p730_p4 = scmp.ne.s32.totalorder %s510_s23, %s729_s4  ;;  %p735_p6 = scmp.lt.s32.totalorder %s729_s4, %s729_s4 }
  0x5a   :  { %279 = vmatprep.subr.bf16.mxu1 %v609_v11 }
  0x5b   :  { %p736_p7 = por %p735_p6, %p734_p5 }
  0x5c   :  { %563 = vmatpush3.bf16.msra.mxu0 %v626_v25 }
  0x5d   :  { %280 = vmatpush1.bf16.msra.mxu1 %v611_v12  ;;  %564 = vmatprep.subr.bf16.mxu0 %v627_v26  ;;  %p737_p8 = pnand %p736_p7, %p730_p4 }
  0x5e   :  { %281 = vmatprep.subr.bf16.mxu1 %v612_v13 }
  0x60   :  { %565 = vmatpush3.bf16.msra.mxu0 %v628_v27 }
  0x61   :  { %282 = vmatpush1.bf16.msra.mxu1 %v614_v14  ;;  %566 = vmatprep.subr.bf16.mxu0 %v629_v28 }
  0x62   :  { %283 = vmatprep.subr.bf16.mxu1 %v615_v15 }
  0x64   :  { %567 = vmatpush3.bf16.msra.mxu0 %v630_v29 }
  0x65   :  { %284 = vmatpush1.bf16.msra.mxu1 %v617_v16  ;;  %568 = vmatprep.subr.bf16.mxu0 %v631_v30 }
  0x66   :  { %285 = vmatprep.subr.bf16.mxu1 %v618_v17 }
  0x68   :  { %569 = vmatpush3.bf16.msra.mxu0 %v632_v31 }
  0x69   :  { %286 = vmatpush1.bf16.msra.mxu1 %v620_v18  ;;  %570 = vmatprep.subr.bf16.mxu0 %v633_v38 }
  0x6c   :  { %571 = vmatpush3.bf16.msra.mxu0 %v634_v39 }
  0x6d   :  { %572 = vmatprep.subr.bf16.mxu0 %v635_v40 }
  0x70   :  { %573 = vmatpush3.bf16.msra.mxu0 %v636_v41 }
 0x120   :  { %v158_v33 = vpop.f32.mrb[0].mxu0 }
 0x121   :  { %v159_v34 = vadd.f32 %v520_v32, %v158_v33  ;;  %v584_v35 = vpop.f32.mrb[1].mxu0 }
 0x123   :  { %v162_v36 = vmax.f32 %v159_v34, 0.0 }
 0x125   :  { %v163_v37 = vpack.c.bf16 %v162_v36, %v162_v36 }
 0x127   :  { %304 = vmatmul.mubr.bf16.vlgmr.msra.gmra.mrb[0].mxu1 %v163_v37 }
 0x1fa   :  { %v305_v49 = vpop.f32.mrb[0].mxu1 }
 0x1fb   :  { %v306_v50 = vadd.f32 %v305_v49, %v184_v47  ;;  %v307_v51 = vpop.f32.mrb[1].mxu1 }
 0x1fc   :  { %v308_v52 = vadd.f32 %v307_v51, %v188_v48  ;;  %v309_v53 = vpop.f32.mrb[2].mxu1 }
 0x1fd   :  { %v312_v54 = vmax.f32 %v306_v50, 0.0  ;;  %v310_v55 = vpop.f32.mrb[3].mxu1 }
 0x1fe   :  { %v313_v56 = vmax.f32 %v308_v52, 0.0 }
 0x1ff   :  { %v314_v58 = vpack.c.bf16 %v312_v54, %v312_v54 }
 0x200   :  { %v315_v57 = vpack.c.bf16 %v313_v56, %v313_v56 }
 0x202   :  { %482 = vmatprep.mubr.bf16.mxu0 %v315_v57 }
 0x203   :  { %483 = vmatmul.mubr.bf16.vlgmr.msra.gmra.mrb[4].mxu0 %v314_v58 }
 0x2d6   :  { %v574_v59 = vpop.f32.mrb[4].mxu0 }
 0x2d7   :  { %v575_v60 = vpop.f32.mrb[5].mxu0 }
 0x2d8   :  { %v576_v62 = vadd.f32 %v575_v60, %v574_v59  ;;  %v577_v63 = vpop.f32.mrb[6].mxu0 }
 0x2d9   :  { %v578_v0 = vpop.f32.mrb[7].mxu0 }
 0x2da   :  { %v485_v1 = vadd.f32 %v576_v62, %v539_v61 }
 0x2dc   :  { %v491_v2 = vsel %vm490_vm3, %v485_v1, -inf }
 0x2dd   :  { %492 = vmax.xlane.f32.xlu0 %v491_v2 }
 0x36a   :  { %v493_v3 = vpop.xlane.xlu0 %492 }
 0x36b   :  { %v494_v4 = vsub.f32 %v485_v1, %v493_v3 }
 0x36d   :  { %v495_v5 = vmul.f32 1.442695, %v494_v4 }
 0x36f   :  { %637 = vpow2.f32 %v495_v5 }
 0x379   :  { %v638_v6 = vpop.eup %637 }
 0x37a   :  { %v497_v7 = vsel %vm490_vm3, %v638_v6, 0.0 }
 0x37b   :  { %498 = vadd.xlane.f32.xlu0 %v497_v7 }
 0x408   :  { %v499_v8 = vpop.xlane.xlu0 %498 }
 0x409   :  { %639 = vrcp.f32 %v499_v8 }
 0x413   :  { %v640_v9 = vpop.eup %639 }
 0x414   :  { %v501_v10 = vmul.f32 %v640_v9, %v638_v6 }
 0x416   :  { %502 = vst [vmem:[#allocation10] sm:$0x3] %v501_v10 }
 0x417   :  { %740 = shalt.err (!%p737_p8)
}
 0x418   :  { %s741_s26 = scalar_lea.hbm %s875_s5, 32 }
 0x419   :  { %p742_p9 = scmp.ne.s32.totalorder %s875_s5, %s741_s26  ;;  %p745_p10 = scmp.lt.u32.totalorder %s741_s26, %s875_s5 }
 0x41b   :  { %p747_p11 = pnand %p745_p10, %p742_p9 }
 0x41d   :  { %750 = shalt.err (!%p747_p11)
}
 0x41e   :  { %512 = dma.vmem_to_hbm [thread:$0]  %s510_s23, 32, %s875_s5, [#allocation4]  }
 0x41f   :  { %757 = dma.done.wait [#allocation4], 32  }
 0x420   :  { %758 = vsyncadd [#allocation4], 4294967264 }
 0x421   :  { %516 = vsyncpa [#allocation3], 1 }
 0x422   :  { %517 = vsyncpa [#allocation6], 1 }
 0x423   :  { %518 = vsyncpa [#allocation9], 1 }
 0x424   :  { %519 = vsyncpa [#allocation4], 1 }

</bundles_post_ra>
